<compile_context>
chip_gen: v7x
topology: tpu7x:2x2x1
jax: 0.10.0
libtpu: 0.0.40
codegen_flags: <defaults>
</compile_context>

<pallas_src>
import jax
import jax.numpy as jnp
from jax.experimental import pallas as pl
from jax.experimental.pallas import tpu as pltpu


def _make_kernel(N, S, pack):
    """Per-batch gather kernel.

    Refs (PrefetchScalarGridSpec, num_scalar_prefetch=1):
      ids_smem : (B, N) int32, SMEM   -- scalar-prefetched ids (DMA addressing)
      idsv_ref : (1, N, 1) int32 VMEM -- vector copy of ids (in-group select)
      mask_ref : (1, N, 1) f32 VMEM
      w_hbm    : (B, S, H) in HBM (pl.ANY), never streamed
      o_ref    : (1, N, H) output block
      gbuf     : (2, N*pack, H) VMEM scratch (double-buffered gather buffer)
      sems     : (2,) DMA semaphores (one per buffer slot)
    """

    def kernel(ids_smem, idsv_ref, mask_ref, w_hbm, o_ref, gbuf, sems):
        b = pl.program_id(0)
        nb = pl.num_programs(0)
        cur = b & 1
        nxt = (b + 1) & 1

        def issue_gather(batch, slot):
            # One small DMA per sent-rep token:
            #   word_vector[batch, g:g+pack, :] -> gbuf[slot, n*pack:(n+1)*pack, :]
            # `pack` rows = one 32-bit-aligned row group for packed dtypes.
            for n in range(N):  # N is small & static -> fully unrolled scalar work
                rid = ids_smem[batch, n]
                if pack == 1:
                    g = rid
                else:
                    g = jnp.minimum((rid // pack) * pack, S - pack)
                pltpu.make_async_copy(
                    w_hbm.at[batch, pl.ds(g, pack), :],
                    gbuf.at[slot, pl.ds(n * pack, pack), :],
                    sems.at[slot],
                ).start()

        def wait_gather(slot):
            for n in range(N):
                pltpu.make_async_copy(
                    w_hbm.at[0, pl.ds(0, pack), :],   # shape-only descriptor for wait
                    gbuf.at[slot, pl.ds(n * pack, pack), :],
                    sems.at[slot],
                ).wait()

        # Prime the pipeline with the first batch.
        @pl.when(b == 0)
        def _():
            issue_gather(0, 0)

        # Prefetch the next batch's rows before blocking on the current ones.
        @pl.when(b + 1 < nb)
        def _():
            issue_gather(b + 1, nxt)

        wait_gather(cur)

        rows = gbuf[cur]                              # (N*pack, H), word_vector dtype
        if pack == 1:
            picked = rows.astype(jnp.float32)         # exact: no MXU involved
        else:
            ids_vec = idsv_ref[0]                     # (N, 1) int32
            grp = jnp.minimum((ids_vec // pack) * pack, S - pack)
            off = ids_vec - grp                       # in-group offset in [0, pack)
            col = jax.lax.broadcasted_iota(jnp.int32, (N, N * pack), 1)
            row = jax.lax.broadcasted_iota(jnp.int32, (N, N * pack), 0)
            onehot = (col == (row * pack + off)).astype(rows.dtype)
            # Exact select: each output element is a single input value * 1.0,
            # accumulated in f32.
            picked = jnp.dot(onehot, rows, preferred_element_type=jnp.float32)

        o_ref[0] = (picked * mask_ref[0]).astype(o_ref.dtype)

    return kernel


@jax.jit
def pooling_sent_rep(word_vector, sent_rep_ids, sent_rep_mask):
    """Equivalent of Pooling(sent_rep_tokens=True).forward.

    Args:
      word_vector:  [B, S, H] float array.
      sent_rep_ids: [B, N] integer indices into axis 1 of word_vector.
      sent_rep_mask:[B, N] bool (or float) mask.

    Returns:
      (output_vector [B, N, H], output_mask [B, N])
    """
    B, S, H = word_vector.shape
    _, N = sent_rep_ids.shape
    isz = jnp.dtype(word_vector.dtype).itemsize
    pack = max(1, 4 // isz)      # rows per DMA so a group covers whole 32-bit words
    if S < pack:
        pack = 1                 # degenerate tiny-sequence fallback

    ids_i32 = sent_rep_ids.astype(jnp.int32)
    ids3 = ids_i32.reshape(B, N, 1)
    mask3 = sent_rep_mask.astype(jnp.float32).reshape(B, N, 1)  # `.float()` in torch

    kernel = _make_kernel(N=N, S=S, pack=pack)

    grid_spec = pltpu.PrefetchScalarGridSpec(
        num_scalar_prefetch=1,
        grid=(B,),
        in_specs=[
            pl.BlockSpec((1, N, 1), lambda b, ids: (b, 0, 0)),   # ids (vector copy)
            pl.BlockSpec((1, N, 1), lambda b, ids: (b, 0, 0)),   # mask
            pl.BlockSpec(memory_space=pl.ANY),                   # word_vector stays in HBM
        ],
        out_specs=pl.BlockSpec((1, N, H), lambda b, ids: (b, 0, 0)),
        scratch_shapes=[
            pltpu.VMEM((2, N * pack, H), word_vector.dtype),
            pltpu.SemaphoreType.DMA((2,)),
        ],
    )

    # Tiny VMEM footprint; set an explicit, generation-safe scoped limit.
    vmem_need = (2 * N * pack * H + 2 * N * H) * isz + 16 * N
    compiler_params = pltpu.CompilerParams(
        # Cross-grid-step manual prefetch => batch axis must run sequentially.
        dimension_semantics=("arbitrary",),
        vmem_limit_bytes=int(min(max(2 * vmem_need + (4 << 20), 24 << 20), 56 << 20)),
    )

    out_vec = pl.pallas_call(
        kernel,
        out_shape=jax.ShapeDtypeStruct((B, N, H), word_vector.dtype),
        grid_spec=grid_spec,
        compiler_params=compiler_params,
    )(ids_i32, ids3, mask3, word_vector)

    return out_vec, sent_rep_mask


def _reference(word_vector, sent_rep_ids, sent_rep_mask):
    gathered = jnp.take_along_axis(word_vector, sent_rep_ids[:, :, None], axis=1)
    return gathered * sent_rep_mask[:, :, None].astype(jnp.float32), sent_rep_mask


if __name__ == "__main__":
    key = jax.random.PRNGKey(0)

    # --- Test 1: float32 (pack == 1, exact row-copy path) --------------------
    k1, k2, k3, key = jax.random.split(key, 4)
    B, S, H, N = 2, 16, 128, 8
    wv = jax.random.normal(k1, (B, S, H), dtype=jnp.float32)
    ids = jax.random.randint(k2, (B, N), 0, S, dtype=jnp.int32)
    ids = ids.at[0, 0].set(S - 1).at[0, 1].set(0)        # exercise edge ids
    msk = jax.random.bernoulli(k3, 0.75, (B, N))

    out_vec, out_mask = pooling_sent_rep(wv, ids, msk)
    out_vec = jax.block_until_ready(out_vec)
    ref_vec, ref_mask = _reference(wv, ids, msk)
    assert out_vec.shape == (B, N, H)
    assert out_mask.shape == (B, N)
    assert jnp.allclose(out_vec, ref_vec, atol=1e-6, rtol=1e-6), "f32 mismatch"
    assert jnp.array_equal(out_mask, ref_mask)

    # --- Test 2: bfloat16 (pack == 2, aligned row-group gather + select) -----
    k1, k2, k3, key = jax.random.split(key, 4)
    B, S, H, N = 2, 40, 256, 16
    wv = jax.random.normal(k1, (B, S, H), dtype=jnp.bfloat16)
    ids = jax.random.randint(k2, (B, N), 0, S, dtype=jnp.int32)
    ids = ids.at[0, 0].set(S - 1).at[0, 1].set(0).at[1, 0].set(S - 2)
    msk = jax.random.bernoulli(k3, 0.75, (B, N))

    out_vec, out_mask = pooling_sent_rep(wv, ids, msk)
    out_vec = jax.block_until_ready(out_vec)
    ref_vec, ref_mask = _reference(wv, ids, msk)
    assert out_vec.dtype == jnp.bfloat16
    assert jnp.allclose(out_vec.astype(jnp.float32),
                        ref_vec.astype(jnp.float32), atol=1e-2, rtol=1e-2), "bf16 mismatch"
    assert jnp.array_equal(out_mask, ref_mask)

    print("KERNEL_OK")
</pallas_src>

<mosaic_0001>
module attributes {stable_mosaic.version = 11 : i64} {
  func.func @kernel(%arg0: i32, %arg1: memref<2x8xi32, #tpu.memory_space<smem>>, %arg2: memref<1x8x1xi32, #tpu.memory_space<vmem>>, %arg3: memref<1x8x1xf32, #tpu.memory_space<vmem>>, %arg4: memref<2x16x128xf32, #tpu.memory_space<any>>, %arg5: memref<1x8x128xf32, #tpu.memory_space<vmem>>, %arg6: memref<2x8x128xf32, #tpu.memory_space<vmem>>, %arg7: memref<2x!tpu.dma_semaphore, #tpu.memory_space<semaphore_mem>>) attributes {dimension_semantics = [#tpu.dimension_semantics<arbitrary>], iteration_bounds = array<i64: 2>, scalar_prefetch = 1 : i64, scratch_operands = 2 : i64, tpu.core_type = #tpu.core_type<tc>, window_params = [{transform_indices = @transform_0, window_bounds = array<i64: 1, 8, 1>}, {transform_indices = @transform_1, window_bounds = array<i64: 1, 8, 1>}, {}, {transform_indices = @transform_3, window_bounds = array<i64: 1, 8, 128>}]} {
    %c1_i32 = arith.constant 1 : i32
    %0 = arith.andi %arg0, %c1_i32 : i32
    %c1_i32_0 = arith.constant 1 : i32
    %1 = arith.addi %arg0, %c1_i32_0 : i32
    %c1_i32_1 = arith.constant 1 : i32
    %2 = arith.andi %1, %c1_i32_1 : i32
    %c0_i32 = arith.constant 0 : i32
    %3 = arith.cmpi eq, %arg0, %c0_i32 : i32
    %4 = arith.extui %3 : i1 to i32
    %c0_i32_2 = arith.constant 0 : i32
    %5 = arith.cmpi ne, %4, %c0_i32_2 : i32
    scf.if %5 {
      %c0_47 = arith.constant 0 : index
      %c0_48 = arith.constant 0 : index
      %68 = memref.load %arg1[%c0_47, %c0_48] : memref<2x8xi32, #tpu.memory_space<smem>>
      %c0_i32_49 = arith.constant 0 : i32
      %c0_i32_50 = arith.constant 0 : i32
      %c0_i32_51 = arith.constant 0 : i32
      %c0_i32_52 = arith.constant 0 : i32
      %69 = tpu.memref_slice %arg4[%c0_i32_49, %68, %c0_i32_52] : memref<2x16x128xf32, #tpu.memory_space<any>> -> memref<1x1x128xf32, #tpu.memory_space<any>>
      %70 = tpu.memref_squeeze %69 : memref<1x1x128xf32, #tpu.memory_space<any>> -> memref<1x128xf32, #tpu.memory_space<any>>
      %c0_i32_53 = arith.constant 0 : i32
      %c0_i32_54 = arith.constant 0 : i32
      %71 = tpu.memref_slice %arg6[%c0_i32_50, %c0_i32_53, %c0_i32_54] : memref<2x8x128xf32, #tpu.memory_space<vmem>> -> memref<1x1x128xf32, #tpu.memory_space<vmem>>
      %72 = tpu.memref_squeeze %71 : memref<1x1x128xf32, #tpu.memory_space<vmem>> -> memref<1x128xf32, #tpu.memory_space<vmem>>
      %73 = tpu.memref_slice %arg7[%c0_i32_51] : memref<2x!tpu.dma_semaphore, #tpu.memory_space<semaphore_mem>> -> memref<1x!tpu.dma_semaphore, #tpu.memory_space<semaphore_mem>>
      %74 = tpu.memref_squeeze %73 : memref<1x!tpu.dma_semaphore, #tpu.memory_space<semaphore_mem>> -> memref<!tpu.dma_semaphore, #tpu.memory_space<semaphore_mem>>
      tpu.enqueue_dma source(%70 : memref<1x128xf32, #tpu.memory_space<any>>) target(%72 : memref<1x128xf32, #tpu.memory_space<vmem>>) target_semaphore(%74 : memref<!tpu.dma_semaphore, #tpu.memory_space<semaphore_mem>>)
      %c0_55 = arith.constant 0 : index
      %c1 = arith.constant 1 : index
      %75 = memref.load %arg1[%c0_55, %c1] : memref<2x8xi32, #tpu.memory_space<smem>>
      %c0_i32_56 = arith.constant 0 : i32
      %c0_i32_57 = arith.constant 0 : i32
      %c0_i32_58 = arith.constant 0 : i32
      %c0_i32_59 = arith.constant 0 : i32
      %76 = tpu.memref_slice %arg4[%c0_i32_56, %75, %c0_i32_59] : memref<2x16x128xf32, #tpu.memory_space<any>> -> memref<1x1x128xf32, #tpu.memory_space<any>>
      %77 = tpu.memref_squeeze %76 : memref<1x1x128xf32, #tpu.memory_space<any>> -> memref<1x128xf32, #tpu.memory_space<any>>
      %c1_i32_60 = arith.constant 1 : i32
      %c0_i32_61 = arith.constant 0 : i32
      %78 = tpu.memref_slice %arg6[%c0_i32_57, %c1_i32_60, %c0_i32_61] : memref<2x8x128xf32, #tpu.memory_space<vmem>> -> memref<1x1x128xf32, #tpu.memory_space<vmem>>
      %79 = tpu.memref_squeeze %78 : memref<1x1x128xf32, #tpu.memory_space<vmem>> -> memref<1x128xf32, #tpu.memory_space<vmem>>
      %80 = tpu.memref_slice %arg7[%c0_i32_58] : memref<2x!tpu.dma_semaphore, #tpu.memory_space<semaphore_mem>> -> memref<1x!tpu.dma_semaphore, #tpu.memory_space<semaphore_mem>>
      %81 = tpu.memref_squeeze %80 : memref<1x!tpu.dma_semaphore, #tpu.memory_space<semaphore_mem>> -> memref<!tpu.dma_semaphore, #tpu.memory_space<semaphore_mem>>
      tpu.enqueue_dma source(%77 : memref<1x128xf32, #tpu.memory_space<any>>) target(%79 : memref<1x128xf32, #tpu.memory_space<vmem>>) target_semaphore(%81 : memref<!tpu.dma_semaphore, #tpu.memory_space<semaphore_mem>>)
      %c0_62 = arith.constant 0 : index
      %c2 = arith.constant 2 : index
      %82 = memref.load %arg1[%c0_62, %c2] : memref<2x8xi32, #tpu.memory_space<smem>>
      %c0_i32_63 = arith.constant 0 : i32
      %c0_i32_64 = arith.constant 0 : i32
      %c0_i32_65 = arith.constant 0 : i32
      %c0_i32_66 = arith.constant 0 : i32
      %83 = tpu.memref_slice %arg4[%c0_i32_63, %82, %c0_i32_66] : memref<2x16x128xf32, #tpu.memory_space<any>> -> memref<1x1x128xf32, #tpu.memory_space<any>>
      %84 = tpu.memref_squeeze %83 : memref<1x1x128xf32, #tpu.memory_space<any>> -> memref<1x128xf32, #tpu.memory_space<any>>
      %c2_i32_67 = arith.constant 2 : i32
      %c0_i32_68 = arith.constant 0 : i32
      %85 = tpu.memref_slice %arg6[%c0_i32_64, %c2_i32_67, %c0_i32_68] : memref<2x8x128xf32, #tpu.memory_space<vmem>> -> memref<1x1x128xf32, #tpu.memory_space<vmem>>
      %86 = tpu.memref_squeeze %85 : memref<1x1x128xf32, #tpu.memory_space<vmem>> -> memref<1x128xf32, #tpu.memory_space<vmem>>
      %87 = tpu.memref_slice %arg7[%c0_i32_65] : memref<2x!tpu.dma_semaphore, #tpu.memory_space<semaphore_mem>> -> memref<1x!tpu.dma_semaphore, #tpu.memory_space<semaphore_mem>>
      %88 = tpu.memref_squeeze %87 : memref<1x!tpu.dma_semaphore, #tpu.memory_space<semaphore_mem>> -> memref<!tpu.dma_semaphore, #tpu.memory_space<semaphore_mem>>
      tpu.enqueue_dma source(%84 : memref<1x128xf32, #tpu.memory_space<any>>) target(%86 : memref<1x128xf32, #tpu.memory_space<vmem>>) target_semaphore(%88 : memref<!tpu.dma_semaphore, #tpu.memory_space<semaphore_mem>>)
      %c0_69 = arith.constant 0 : index
      %c3 = arith.constant 3 : index
      %89 = memref.load %arg1[%c0_69, %c3] : memref<2x8xi32, #tpu.memory_space<smem>>
      %c0_i32_70 = arith.constant 0 : i32
      %c0_i32_71 = arith.constant 0 : i32
      %c0_i32_72 = arith.constant 0 : i32
      %c0_i32_73 = arith.constant 0 : i32
      %90 = tpu.memref_slice %arg4[%c0_i32_70, %89, %c0_i32_73] : memref<2x16x128xf32, #tpu.memory_space<any>> -> memref<1x1x128xf32, #tpu.memory_space<any>>
      %91 = tpu.memref_squeeze %90 : memref<1x1x128xf32, #tpu.memory_space<any>> -> memref<1x128xf32, #tpu.memory_space<any>>
      %c3_i32_74 = arith.constant 3 : i32
      %c0_i32_75 = arith.constant 0 : i32
      %92 = tpu.memref_slice %arg6[%c0_i32_71, %c3_i32_74, %c0_i32_75] : memref<2x8x128xf32, #tpu.memory_space<vmem>> -> memref<1x1x128xf32, #tpu.memory_space<vmem>>
      %93 = tpu.memref_squeeze %92 : memref<1x1x128xf32, #tpu.memory_space<vmem>> -> memref<1x128xf32, #tpu.memory_space<vmem>>
      %94 = tpu.memref_slice %arg7[%c0_i32_72] : memref<2x!tpu.dma_semaphore, #tpu.memory_space<semaphore_mem>> -> memref<1x!tpu.dma_semaphore, #tpu.memory_space<semaphore_mem>>
      %95 = tpu.memref_squeeze %94 : memref<1x!tpu.dma_semaphore, #tpu.memory_space<semaphore_mem>> -> memref<!tpu.dma_semaphore, #tpu.memory_space<semaphore_mem>>
      tpu.enqueue_dma source(%91 : memref<1x128xf32, #tpu.memory_space<any>>) target(%93 : memref<1x128xf32, #tpu.memory_space<vmem>>) target_semaphore(%95 : memref<!tpu.dma_semaphore, #tpu.memory_space<semaphore_mem>>)
      %c0_76 = arith.constant 0 : index
      %c4 = arith.constant 4 : index
      %96 = memref.load %arg1[%c0_76, %c4] : memref<2x8xi32, #tpu.memory_space<smem>>
      %c0_i32_77 = arith.constant 0 : i32
      %c0_i32_78 = arith.constant 0 : i32
      %c0_i32_79 = arith.constant 0 : i32
      %c0_i32_80 = arith.constant 0 : i32
      %97 = tpu.memref_slice %arg4[%c0_i32_77, %96, %c0_i32_80] : memref<2x16x128xf32, #tpu.memory_space<any>> -> memref<1x1x128xf32, #tpu.memory_space<any>>
      %98 = tpu.memref_squeeze %97 : memref<1x1x128xf32, #tpu.memory_space<any>> -> memref<1x128xf32, #tpu.memory_space<any>>
      %c4_i32_81 = arith.constant 4 : i32
      %c0_i32_82 = arith.constant 0 : i32
      %99 = tpu.memref_slice %arg6[%c0_i32_78, %c4_i32_81, %c0_i32_82] : memref<2x8x128xf32, #tpu.memory_space<vmem>> -> memref<1x1x128xf32, #tpu.memory_space<vmem>>
      %100 = tpu.memref_squeeze %99 : memref<1x1x128xf32, #tpu.memory_space<vmem>> -> memref<1x128xf32, #tpu.memory_space<vmem>>
      %101 = tpu.memref_slice %arg7[%c0_i32_79] : memref<2x!tpu.dma_semaphore, #tpu.memory_space<semaphore_mem>> -> memref<1x!tpu.dma_semaphore, #tpu.memory_space<semaphore_mem>>
      %102 = tpu.memref_squeeze %101 : memref<1x!tpu.dma_semaphore, #tpu.memory_space<semaphore_mem>> -> memref<!tpu.dma_semaphore, #tpu.memory_space<semaphore_mem>>
      tpu.enqueue_dma source(%98 : memref<1x128xf32, #tpu.memory_space<any>>) target(%100 : memref<1x128xf32, #tpu.memory_space<vmem>>) target_semaphore(%102 : memref<!tpu.dma_semaphore, #tpu.memory_space<semaphore_mem>>)
      %c0_83 = arith.constant 0 : index
      %c5 = arith.constant 5 : index
      %103 = memref.load %arg1[%c0_83, %c5] : memref<2x8xi32, #tpu.memory_space<smem>>
      %c0_i32_84 = arith.constant 0 : i32
      %c0_i32_85 = arith.constant 0 : i32
      %c0_i32_86 = arith.constant 0 : i32
      %c0_i32_87 = arith.constant 0 : i32
      %104 = tpu.memref_slice %arg4[%c0_i32_84, %103, %c0_i32_87] : memref<2x16x128xf32, #tpu.memory_space<any>> -> memref<1x1x128xf32, #tpu.memory_space<any>>
      %105 = tpu.memref_squeeze %104 : memref<1x1x128xf32, #tpu.memory_space<any>> -> memref<1x128xf32, #tpu.memory_space<any>>
      %c5_i32_88 = arith.constant 5 : i32
      %c0_i32_89 = arith.constant 0 : i32
      %106 = tpu.memref_slice %arg6[%c0_i32_85, %c5_i32_88, %c0_i32_89] : memref<2x8x128xf32, #tpu.memory_space<vmem>> -> memref<1x1x128xf32, #tpu.memory_space<vmem>>
      %107 = tpu.memref_squeeze %106 : memref<1x1x128xf32, #tpu.memory_space<vmem>> -> memref<1x128xf32, #tpu.memory_space<vmem>>
      %108 = tpu.memref_slice %arg7[%c0_i32_86] : memref<2x!tpu.dma_semaphore, #tpu.memory_space<semaphore_mem>> -> memref<1x!tpu.dma_semaphore, #tpu.memory_space<semaphore_mem>>
      %109 = tpu.memref_squeeze %108 : memref<1x!tpu.dma_semaphore, #tpu.memory_space<semaphore_mem>> -> memref<!tpu.dma_semaphore, #tpu.memory_space<semaphore_mem>>
      tpu.enqueue_dma source(%105 : memref<1x128xf32, #tpu.memory_space<any>>) target(%107 : memref<1x128xf32, #tpu.memory_space<vmem>>) target_semaphore(%109 : memref<!tpu.dma_semaphore, #tpu.memory_space<semaphore_mem>>)
      %c0_90 = arith.constant 0 : index
      %c6 = arith.constant 6 : index
      %110 = memref.load %arg1[%c0_90, %c6] : memref<2x8xi32, #tpu.memory_space<smem>>
      %c0_i32_91 = arith.constant 0 : i32
      %c0_i32_92 = arith.constant 0 : i32
      %c0_i32_93 = arith.constant 0 : i32
      %c0_i32_94 = arith.constant 0 : i32
      %111 = tpu.memref_slice %arg4[%c0_i32_91, %110, %c0_i32_94] : memref<2x16x128xf32, #tpu.memory_space<any>> -> memref<1x1x128xf32, #tpu.memory_space<any>>
      %112 = tpu.memref_squeeze %111 : memref<1x1x128xf32, #tpu.memory_space<any>> -> memref<1x128xf32, #tpu.memory_space<any>>
      %c6_i32_95 = arith.constant 6 : i32
      %c0_i32_96 = arith.constant 0 : i32
      %113 = tpu.memref_slice %arg6[%c0_i32_92, %c6_i32_95, %c0_i32_96] : memref<2x8x128xf32, #tpu.memory_space<vmem>> -> memref<1x1x128xf32, #tpu.memory_space<vmem>>
      %114 = tpu.memref_squeeze %113 : memref<1x1x128xf32, #tpu.memory_space<vmem>> -> memref<1x128xf32, #tpu.memory_space<vmem>>
      %115 = tpu.memref_slice %arg7[%c0_i32_93] : memref<2x!tpu.dma_semaphore, #tpu.memory_space<semaphore_mem>> -> memref<1x!tpu.dma_semaphore, #tpu.memory_space<semaphore_mem>>
      %116 = tpu.memref_squeeze %115 : memref<1x!tpu.dma_semaphore, #tpu.memory_space<semaphore_mem>> -> memref<!tpu.dma_semaphore, #tpu.memory_space<semaphore_mem>>
      tpu.enqueue_dma source(%112 : memref<1x128xf32, #tpu.memory_space<any>>) target(%114 : memref<1x128xf32, #tpu.memory_space<vmem>>) target_semaphore(%116 : memref<!tpu.dma_semaphore, #tpu.memory_space<semaphore_mem>>)
      %c0_97 = arith.constant 0 : index
      %c7 = arith.constant 7 : index
      %117 = memref.load %arg1[%c0_97, %c7] : memref<2x8xi32, #tpu.memory_space<smem>>
      %c0_i32_98 = arith.constant 0 : i32
      %c0_i32_99 = arith.constant 0 : i32
      %c0_i32_100 = arith.constant 0 : i32
      %c0_i32_101 = arith.constant 0 : i32
      %118 = tpu.memref_slice %arg4[%c0_i32_98, %117, %c0_i32_101] : memref<2x16x128xf32, #tpu.memory_space<any>> -> memref<1x1x128xf32, #tpu.memory_space<any>>
      %119 = tpu.memref_squeeze %118 : memref<1x1x128xf32, #tpu.memory_space<any>> -> memref<1x128xf32, #tpu.memory_space<any>>
      %c7_i32_102 = arith.constant 7 : i32
      %c0_i32_103 = arith.constant 0 : i32
      %120 = tpu.memref_slice %arg6[%c0_i32_99, %c7_i32_102, %c0_i32_103] : memref<2x8x128xf32, #tpu.memory_space<vmem>> -> memref<1x1x128xf32, #tpu.memory_space<vmem>>
      %121 = tpu.memref_squeeze %120 : memref<1x1x128xf32, #tpu.memory_space<vmem>> -> memref<1x128xf32, #tpu.memory_space<vmem>>
      %122 = tpu.memref_slice %arg7[%c0_i32_100] : memref<2x!tpu.dma_semaphore, #tpu.memory_space<semaphore_mem>> -> memref<1x!tpu.dma_semaphore, #tpu.memory_space<semaphore_mem>>
      %123 = tpu.memref_squeeze %122 : memref<1x!tpu.dma_semaphore, #tpu.memory_space<semaphore_mem>> -> memref<!tpu.dma_semaphore, #tpu.memory_space<semaphore_mem>>
      tpu.enqueue_dma source(%119 : memref<1x128xf32, #tpu.memory_space<any>>) target(%121 : memref<1x128xf32, #tpu.memory_space<vmem>>) target_semaphore(%123 : memref<!tpu.dma_semaphore, #tpu.memory_space<semaphore_mem>>)
    } else {
    }
    %c1_i32_3 = arith.constant 1 : i32
    %6 = arith.addi %arg0, %c1_i32_3 : i32
    %c2_i32 = arith.constant 2 : i32
    %7 = arith.cmpi slt, %6, %c2_i32 : i32
    %8 = arith.extui %7 : i1 to i32
    %c0_i32_4 = arith.constant 0 : i32
    %9 = arith.cmpi ne, %8, %c0_i32_4 : i32
    scf.if %9 {
      %c1_i32_47 = arith.constant 1 : i32
      %68 = arith.addi %arg0, %c1_i32_47 : i32
      %69 = arith.index_cast %68 : i32 to index
      %c0_48 = arith.constant 0 : index
      %70 = memref.load %arg1[%69, %c0_48] : memref<2x8xi32, #tpu.memory_space<smem>>
      %c0_i32_49 = arith.constant 0 : i32
      %71 = tpu.memref_slice %arg4[%68, %70, %c0_i32_49] : memref<2x16x128xf32, #tpu.memory_space<any>> -> memref<1x1x128xf32, #tpu.memory_space<any>>
      %72 = tpu.memref_squeeze %71 : memref<1x1x128xf32, #tpu.memory_space<any>> -> memref<1x128xf32, #tpu.memory_space<any>>
      %c0_i32_50 = arith.constant 0 : i32
      %c0_i32_51 = arith.constant 0 : i32
      %73 = tpu.memref_slice %arg6[%2, %c0_i32_50, %c0_i32_51] : memref<2x8x128xf32, #tpu.memory_space<vmem>> -> memref<1x1x128xf32, #tpu.memory_space<vmem>>
      %74 = tpu.memref_squeeze %73 : memref<1x1x128xf32, #tpu.memory_space<vmem>> -> memref<1x128xf32, #tpu.memory_space<vmem>>
      %75 = tpu.memref_slice %arg7[%2] : memref<2x!tpu.dma_semaphore, #tpu.memory_space<semaphore_mem>> -> memref<1x!tpu.dma_semaphore, #tpu.memory_space<semaphore_mem>>
      %76 = tpu.memref_squeeze %75 : memref<1x!tpu.dma_semaphore, #tpu.memory_space<semaphore_mem>> -> memref<!tpu.dma_semaphore, #tpu.memory_space<semaphore_mem>>
      tpu.enqueue_dma source(%72 : memref<1x128xf32, #tpu.memory_space<any>>) target(%74 : memref<1x128xf32, #tpu.memory_space<vmem>>) target_semaphore(%76 : memref<!tpu.dma_semaphore, #tpu.memory_space<semaphore_mem>>)
      %77 = arith.index_cast %68 : i32 to index
      %c1 = arith.constant 1 : index
      %78 = memref.load %arg1[%77, %c1] : memref<2x8xi32, #tpu.memory_space<smem>>
      %c0_i32_52 = arith.constant 0 : i32
      %79 = tpu.memref_slice %arg4[%68, %78, %c0_i32_52] : memref<2x16x128xf32, #tpu.memory_space<any>> -> memref<1x1x128xf32, #tpu.memory_space<any>>
      %80 = tpu.memref_squeeze %79 : memref<1x1x128xf32, #tpu.memory_space<any>> -> memref<1x128xf32, #tpu.memory_space<any>>
      %c1_i32_53 = arith.constant 1 : i32
      %c0_i32_54 = arith.constant 0 : i32
      %81 = tpu.memref_slice %arg6[%2, %c1_i32_53, %c0_i32_54] : memref<2x8x128xf32, #tpu.memory_space<vmem>> -> memref<1x1x128xf32, #tpu.memory_space<vmem>>
      %82 = tpu.memref_squeeze %81 : memref<1x1x128xf32, #tpu.memory_space<vmem>> -> memref<1x128xf32, #tpu.memory_space<vmem>>
      %83 = tpu.memref_slice %arg7[%2] : memref<2x!tpu.dma_semaphore, #tpu.memory_space<semaphore_mem>> -> memref<1x!tpu.dma_semaphore, #tpu.memory_space<semaphore_mem>>
      %84 = tpu.memref_squeeze %83 : memref<1x!tpu.dma_semaphore, #tpu.memory_space<semaphore_mem>> -> memref<!tpu.dma_semaphore, #tpu.memory_space<semaphore_mem>>
      tpu.enqueue_dma source(%80 : memref<1x128xf32, #tpu.memory_space<any>>) target(%82 : memref<1x128xf32, #tpu.memory_space<vmem>>) target_semaphore(%84 : memref<!tpu.dma_semaphore, #tpu.memory_space<semaphore_mem>>)
      %85 = arith.index_cast %68 : i32 to index
      %c2 = arith.constant 2 : index
      %86 = memref.load %arg1[%85, %c2] : memref<2x8xi32, #tpu.memory_space<smem>>
      %c0_i32_55 = arith.constant 0 : i32
      %87 = tpu.memref_slice %arg4[%68, %86, %c0_i32_55] : memref<2x16x128xf32, #tpu.memory_space<any>> -> memref<1x1x128xf32, #tpu.memory_space<any>>
      %88 = tpu.memref_squeeze %87 : memref<1x1x128xf32, #tpu.memory_space<any>> -> memref<1x128xf32, #tpu.memory_space<any>>
      %c2_i32_56 = arith.constant 2 : i32
      %c0_i32_57 = arith.constant 0 : i32
      %89 = tpu.memref_slice %arg6[%2, %c2_i32_56, %c0_i32_57] : memref<2x8x128xf32, #tpu.memory_space<vmem>> -> memref<1x1x128xf32, #tpu.memory_space<vmem>>
      %90 = tpu.memref_squeeze %89 : memref<1x1x128xf32, #tpu.memory_space<vmem>> -> memref<1x128xf32, #tpu.memory_space<vmem>>
      %91 = tpu.memref_slice %arg7[%2] : memref<2x!tpu.dma_semaphore, #tpu.memory_space<semaphore_mem>> -> memref<1x!tpu.dma_semaphore, #tpu.memory_space<semaphore_mem>>
      %92 = tpu.memref_squeeze %91 : memref<1x!tpu.dma_semaphore, #tpu.memory_space<semaphore_mem>> -> memref<!tpu.dma_semaphore, #tpu.memory_space<semaphore_mem>>
      tpu.enqueue_dma source(%88 : memref<1x128xf32, #tpu.memory_space<any>>) target(%90 : memref<1x128xf32, #tpu.memory_space<vmem>>) target_semaphore(%92 : memref<!tpu.dma_semaphore, #tpu.memory_space<semaphore_mem>>)
      %93 = arith.index_cast %68 : i32 to index
      %c3 = arith.constant 3 : index
      %94 = memref.load %arg1[%93, %c3] : memref<2x8xi32, #tpu.memory_space<smem>>
      %c0_i32_58 = arith.constant 0 : i32
      %95 = tpu.memref_slice %arg4[%68, %94, %c0_i32_58] : memref<2x16x128xf32, #tpu.memory_space<any>> -> memref<1x1x128xf32, #tpu.memory_space<any>>
      %96 = tpu.memref_squeeze %95 : memref<1x1x128xf32, #tpu.memory_space<any>> -> memref<1x128xf32, #tpu.memory_space<any>>
      %c3_i32_59 = arith.constant 3 : i32
      %c0_i32_60 = arith.constant 0 : i32
      %97 = tpu.memref_slice %arg6[%2, %c3_i32_59, %c0_i32_60] : memref<2x8x128xf32, #tpu.memory_space<vmem>> -> memref<1x1x128xf32, #tpu.memory_space<vmem>>
      %98 = tpu.memref_squeeze %97 : memref<1x1x128xf32, #tpu.memory_space<vmem>> -> memref<1x128xf32, #tpu.memory_space<vmem>>
      %99 = tpu.memref_slice %arg7[%2] : memref<2x!tpu.dma_semaphore, #tpu.memory_space<semaphore_mem>> -> memref<1x!tpu.dma_semaphore, #tpu.memory_space<semaphore_mem>>
      %100 = tpu.memref_squeeze %99 : memref<1x!tpu.dma_semaphore, #tpu.memory_space<semaphore_mem>> -> memref<!tpu.dma_semaphore, #tpu.memory_space<semaphore_mem>>
      tpu.enqueue_dma source(%96 : memref<1x128xf32, #tpu.memory_space<any>>) target(%98 : memref<1x128xf32, #tpu.memory_space<vmem>>) target_semaphore(%100 : memref<!tpu.dma_semaphore, #tpu.memory_space<semaphore_mem>>)
      %101 = arith.index_cast %68 : i32 to index
      %c4 = arith.constant 4 : index
      %102 = memref.load %arg1[%101, %c4] : memref<2x8xi32, #tpu.memory_space<smem>>
      %c0_i32_61 = arith.constant 0 : i32
      %103 = tpu.memref_slice %arg4[%68, %102, %c0_i32_61] : memref<2x16x128xf32, #tpu.memory_space<any>> -> memref<1x1x128xf32, #tpu.memory_space<any>>
      %104 = tpu.memref_squeeze %103 : memref<1x1x128xf32, #tpu.memory_space<any>> -> memref<1x128xf32, #tpu.memory_space<any>>
      %c4_i32_62 = arith.constant 4 : i32
      %c0_i32_63 = arith.constant 0 : i32
      %105 = tpu.memref_slice %arg6[%2, %c4_i32_62, %c0_i32_63] : memref<2x8x128xf32, #tpu.memory_space<vmem>> -> memref<1x1x128xf32, #tpu.memory_space<vmem>>
      %106 = tpu.memref_squeeze %105 : memref<1x1x128xf32, #tpu.memory_space<vmem>> -> memref<1x128xf32, #tpu.memory_space<vmem>>
      %107 = tpu.memref_slice %arg7[%2] : memref<2x!tpu.dma_semaphore, #tpu.memory_space<semaphore_mem>> -> memref<1x!tpu.dma_semaphore, #tpu.memory_space<semaphore_mem>>
      %108 = tpu.memref_squeeze %107 : memref<1x!tpu.dma_semaphore, #tpu.memory_space<semaphore_mem>> -> memref<!tpu.dma_semaphore, #tpu.memory_space<semaphore_mem>>
      tpu.enqueue_dma source(%104 : memref<1x128xf32, #tpu.memory_space<any>>) target(%106 : memref<1x128xf32, #tpu.memory_space<vmem>>) target_semaphore(%108 : memref<!tpu.dma_semaphore, #tpu.memory_space<semaphore_mem>>)
      %109 = arith.index_cast %68 : i32 to index
      %c5 = arith.constant 5 : index
      %110 = memref.load %arg1[%109, %c5] : memref<2x8xi32, #tpu.memory_space<smem>>
      %c0_i32_64 = arith.constant 0 : i32
      %111 = tpu.memref_slice %arg4[%68, %110, %c0_i32_64] : memref<2x16x128xf32, #tpu.memory_space<any>> -> memref<1x1x128xf32, #tpu.memory_space<any>>
      %112 = tpu.memref_squeeze %111 : memref<1x1x128xf32, #tpu.memory_space<any>> -> memref<1x128xf32, #tpu.memory_space<any>>
      %c5_i32_65 = arith.constant 5 : i32
      %c0_i32_66 = arith.constant 0 : i32
      %113 = tpu.memref_slice %arg6[%2, %c5_i32_65, %c0_i32_66] : memref<2x8x128xf32, #tpu.memory_space<vmem>> -> memref<1x1x128xf32, #tpu.memory_space<vmem>>
      %114 = tpu.memref_squeeze %113 : memref<1x1x128xf32, #tpu.memory_space<vmem>> -> memref<1x128xf32, #tpu.memory_space<vmem>>
      %115 = tpu.memref_slice %arg7[%2] : memref<2x!tpu.dma_semaphore, #tpu.memory_space<semaphore_mem>> -> memref<1x!tpu.dma_semaphore, #tpu.memory_space<semaphore_mem>>
      %116 = tpu.memref_squeeze %115 : memref<1x!tpu.dma_semaphore, #tpu.memory_space<semaphore_mem>> -> memref<!tpu.dma_semaphore, #tpu.memory_space<semaphore_mem>>
      tpu.enqueue_dma source(%112 : memref<1x128xf32, #tpu.memory_space<any>>) target(%114 : memref<1x128xf32, #tpu.memory_space<vmem>>) target_semaphore(%116 : memref<!tpu.dma_semaphore, #tpu.memory_space<semaphore_mem>>)
      %117 = arith.index_cast %68 : i32 to index
      %c6 = arith.constant 6 : index
      %118 = memref.load %arg1[%117, %c6] : memref<2x8xi32, #tpu.memory_space<smem>>
      %c0_i32_67 = arith.constant 0 : i32
      %119 = tpu.memref_slice %arg4[%68, %118, %c0_i32_67] : memref<2x16x128xf32, #tpu.memory_space<any>> -> memref<1x1x128xf32, #tpu.memory_space<any>>
      %120 = tpu.memref_squeeze %119 : memref<1x1x128xf32, #tpu.memory_space<any>> -> memref<1x128xf32, #tpu.memory_space<any>>
      %c6_i32_68 = arith.constant 6 : i32
      %c0_i32_69 = arith.constant 0 : i32
      %121 = tpu.memref_slice %arg6[%2, %c6_i32_68, %c0_i32_69] : memref<2x8x128xf32, #tpu.memory_space<vmem>> -> memref<1x1x128xf32, #tpu.memory_space<vmem>>
      %122 = tpu.memref_squeeze %121 : memref<1x1x128xf32, #tpu.memory_space<vmem>> -> memref<1x128xf32, #tpu.memory_space<vmem>>
      %123 = tpu.memref_slice %arg7[%2] : memref<2x!tpu.dma_semaphore, #tpu.memory_space<semaphore_mem>> -> memref<1x!tpu.dma_semaphore, #tpu.memory_space<semaphore_mem>>
      %124 = tpu.memref_squeeze %123 : memref<1x!tpu.dma_semaphore, #tpu.memory_space<semaphore_mem>> -> memref<!tpu.dma_semaphore, #tpu.memory_space<semaphore_mem>>
      tpu.enqueue_dma source(%120 : memref<1x128xf32, #tpu.memory_space<any>>) target(%122 : memref<1x128xf32, #tpu.memory_space<vmem>>) target_semaphore(%124 : memref<!tpu.dma_semaphore, #tpu.memory_space<semaphore_mem>>)
      %125 = arith.index_cast %68 : i32 to index
      %c7 = arith.constant 7 : index
      %126 = memref.load %arg1[%125, %c7] : memref<2x8xi32, #tpu.memory_space<smem>>
      %c0_i32_70 = arith.constant 0 : i32
      %127 = tpu.memref_slice %arg4[%68, %126, %c0_i32_70] : memref<2x16x128xf32, #tpu.memory_space<any>> -> memref<1x1x128xf32, #tpu.memory_space<any>>
      %128 = tpu.memref_squeeze %127 : memref<1x1x128xf32, #tpu.memory_space<any>> -> memref<1x128xf32, #tpu.memory_space<any>>
      %c7_i32_71 = arith.constant 7 : i32
      %c0_i32_72 = arith.constant 0 : i32
      %129 = tpu.memref_slice %arg6[%2, %c7_i32_71, %c0_i32_72] : memref<2x8x128xf32, #tpu.memory_space<vmem>> -> memref<1x1x128xf32, #tpu.memory_space<vmem>>
      %130 = tpu.memref_squeeze %129 : memref<1x1x128xf32, #tpu.memory_space<vmem>> -> memref<1x128xf32, #tpu.memory_space<vmem>>
      %131 = tpu.memref_slice %arg7[%2] : memref<2x!tpu.dma_semaphore, #tpu.memory_space<semaphore_mem>> -> memref<1x!tpu.dma_semaphore, #tpu.memory_space<semaphore_mem>>
      %132 = tpu.memref_squeeze %131 : memref<1x!tpu.dma_semaphore, #tpu.memory_space<semaphore_mem>> -> memref<!tpu.dma_semaphore, #tpu.memory_space<semaphore_mem>>
      tpu.enqueue_dma source(%128 : memref<1x128xf32, #tpu.memory_space<any>>) target(%130 : memref<1x128xf32, #tpu.memory_space<vmem>>) target_semaphore(%132 : memref<!tpu.dma_semaphore, #tpu.memory_space<semaphore_mem>>)
    } else {
    }
    %c0_i32_5 = arith.constant 0 : i32
    %c0_i32_6 = arith.constant 0 : i32
    %c0_i32_7 = arith.constant 0 : i32
    %10 = tpu.memref_slice %arg4[%c0_i32_5, %c0_i32_6, %c0_i32_7] : memref<2x16x128xf32, #tpu.memory_space<any>> -> memref<1x1x128xf32, #tpu.memory_space<any>>
    %11 = tpu.memref_squeeze %10 : memref<1x1x128xf32, #tpu.memory_space<any>> -> memref<1x128xf32, #tpu.memory_space<any>>
    %c0_i32_8 = arith.constant 0 : i32
    %c0_i32_9 = arith.constant 0 : i32
    %12 = tpu.memref_slice %arg6[%0, %c0_i32_8, %c0_i32_9] : memref<2x8x128xf32, #tpu.memory_space<vmem>> -> memref<1x1x128xf32, #tpu.memory_space<vmem>>
    %13 = tpu.memref_squeeze %12 : memref<1x1x128xf32, #tpu.memory_space<vmem>> -> memref<1x128xf32, #tpu.memory_space<vmem>>
    %14 = tpu.memref_slice %arg7[%0] : memref<2x!tpu.dma_semaphore, #tpu.memory_space<semaphore_mem>> -> memref<1x!tpu.dma_semaphore, #tpu.memory_space<semaphore_mem>>
    %15 = tpu.memref_squeeze %14 : memref<1x!tpu.dma_semaphore, #tpu.memory_space<semaphore_mem>> -> memref<!tpu.dma_semaphore, #tpu.memory_space<semaphore_mem>>
    tpu.wait_dma2 semaphore(%15 : memref<!tpu.dma_semaphore, #tpu.memory_space<semaphore_mem>>) src(%11 : memref<1x128xf32, #tpu.memory_space<any>>) dst(%13 : memref<1x128xf32, #tpu.memory_space<vmem>>)
    %c0_i32_10 = arith.constant 0 : i32
    %c0_i32_11 = arith.constant 0 : i32
    %c0_i32_12 = arith.constant 0 : i32
    %16 = tpu.memref_slice %arg4[%c0_i32_10, %c0_i32_11, %c0_i32_12] : memref<2x16x128xf32, #tpu.memory_space<any>> -> memref<1x1x128xf32, #tpu.memory_space<any>>
    %17 = tpu.memref_squeeze %16 : memref<1x1x128xf32, #tpu.memory_space<any>> -> memref<1x128xf32, #tpu.memory_space<any>>
    %c1_i32_13 = arith.constant 1 : i32
    %c0_i32_14 = arith.constant 0 : i32
    %18 = tpu.memref_slice %arg6[%0, %c1_i32_13, %c0_i32_14] : memref<2x8x128xf32, #tpu.memory_space<vmem>> -> memref<1x1x128xf32, #tpu.memory_space<vmem>>
    %19 = tpu.memref_squeeze %18 : memref<1x1x128xf32, #tpu.memory_space<vmem>> -> memref<1x128xf32, #tpu.memory_space<vmem>>
    %20 = tpu.memref_slice %arg7[%0] : memref<2x!tpu.dma_semaphore, #tpu.memory_space<semaphore_mem>> -> memref<1x!tpu.dma_semaphore, #tpu.memory_space<semaphore_mem>>
    %21 = tpu.memref_squeeze %20 : memref<1x!tpu.dma_semaphore, #tpu.memory_space<semaphore_mem>> -> memref<!tpu.dma_semaphore, #tpu.memory_space<semaphore_mem>>
    tpu.wait_dma2 semaphore(%21 : memref<!tpu.dma_semaphore, #tpu.memory_space<semaphore_mem>>) src(%17 : memref<1x128xf32, #tpu.memory_space<any>>) dst(%19 : memref<1x128xf32, #tpu.memory_space<vmem>>)
    %c0_i32_15 = arith.constant 0 : i32
    %c0_i32_16 = arith.constant 0 : i32
    %c0_i32_17 = arith.constant 0 : i32
    %22 = tpu.memref_slice %arg4[%c0_i32_15, %c0_i32_16, %c0_i32_17] : memref<2x16x128xf32, #tpu.memory_space<any>> -> memref<1x1x128xf32, #tpu.memory_space<any>>
    %23 = tpu.memref_squeeze %22 : memref<1x1x128xf32, #tpu.memory_space<any>> -> memref<1x128xf32, #tpu.memory_space<any>>
    %c2_i32_18 = arith.constant 2 : i32
    %c0_i32_19 = arith.constant 0 : i32
    %24 = tpu.memref_slice %arg6[%0, %c2_i32_18, %c0_i32_19] : memref<2x8x128xf32, #tpu.memory_space<vmem>> -> memref<1x1x128xf32, #tpu.memory_space<vmem>>
    %25 = tpu.memref_squeeze %24 : memref<1x1x128xf32, #tpu.memory_space<vmem>> -> memref<1x128xf32, #tpu.memory_space<vmem>>
    %26 = tpu.memref_slice %arg7[%0] : memref<2x!tpu.dma_semaphore, #tpu.memory_space<semaphore_mem>> -> memref<1x!tpu.dma_semaphore, #tpu.memory_space<semaphore_mem>>
    %27 = tpu.memref_squeeze %26 : memref<1x!tpu.dma_semaphore, #tpu.memory_space<semaphore_mem>> -> memref<!tpu.dma_semaphore, #tpu.memory_space<semaphore_mem>>
    tpu.wait_dma2 semaphore(%27 : memref<!tpu.dma_semaphore, #tpu.memory_space<semaphore_mem>>) src(%23 : memref<1x128xf32, #tpu.memory_space<any>>) dst(%25 : memref<1x128xf32, #tpu.memory_space<vmem>>)
    %c0_i32_20 = arith.constant 0 : i32
    %c0_i32_21 = arith.constant 0 : i32
    %c0_i32_22 = arith.constant 0 : i32
    %28 = tpu.memref_slice %arg4[%c0_i32_20, %c0_i32_21, %c0_i32_22] : memref<2x16x128xf32, #tpu.memory_space<any>> -> memref<1x1x128xf32, #tpu.memory_space<any>>
    %29 = tpu.memref_squeeze %28 : memref<1x1x128xf32, #tpu.memory_space<any>> -> memref<1x128xf32, #tpu.memory_space<any>>
    %c3_i32 = arith.constant 3 : i32
    %c0_i32_23 = arith.constant 0 : i32
    %30 = tpu.memref_slice %arg6[%0, %c3_i32, %c0_i32_23] : memref<2x8x128xf32, #tpu.memory_space<vmem>> -> memref<1x1x128xf32, #tpu.memory_space<vmem>>
    %31 = tpu.memref_squeeze %30 : memref<1x1x128xf32, #tpu.memory_space<vmem>> -> memref<1x128xf32, #tpu.memory_space<vmem>>
    %32 = tpu.memref_slice %arg7[%0] : memref<2x!tpu.dma_semaphore, #tpu.memory_space<semaphore_mem>> -> memref<1x!tpu.dma_semaphore, #tpu.memory_space<semaphore_mem>>
    %33 = tpu.memref_squeeze %32 : memref<1x!tpu.dma_semaphore, #tpu.memory_space<semaphore_mem>> -> memref<!tpu.dma_semaphore, #tpu.memory_space<semaphore_mem>>
    tpu.wait_dma2 semaphore(%33 : memref<!tpu.dma_semaphore, #tpu.memory_space<semaphore_mem>>) src(%29 : memref<1x128xf32, #tpu.memory_space<any>>) dst(%31 : memref<1x128xf32, #tpu.memory_space<vmem>>)
    %c0_i32_24 = arith.constant 0 : i32
    %c0_i32_25 = arith.constant 0 : i32
    %c0_i32_26 = arith.constant 0 : i32
    %34 = tpu.memref_slice %arg4[%c0_i32_24, %c0_i32_25, %c0_i32_26] : memref<2x16x128xf32, #tpu.memory_space<any>> -> memref<1x1x128xf32, #tpu.memory_space<any>>
    %35 = tpu.memref_squeeze %34 : memref<1x1x128xf32, #tpu.memory_space<any>> -> memref<1x128xf32, #tpu.memory_space<any>>
    %c4_i32 = arith.constant 4 : i32
    %c0_i32_27 = arith.constant 0 : i32
    %36 = tpu.memref_slice %arg6[%0, %c4_i32, %c0_i32_27] : memref<2x8x128xf32, #tpu.memory_space<vmem>> -> memref<1x1x128xf32, #tpu.memory_space<vmem>>
    %37 = tpu.memref_squeeze %36 : memref<1x1x128xf32, #tpu.memory_space<vmem>> -> memref<1x128xf32, #tpu.memory_space<vmem>>
    %38 = tpu.memref_slice %arg7[%0] : memref<2x!tpu.dma_semaphore, #tpu.memory_space<semaphore_mem>> -> memref<1x!tpu.dma_semaphore, #tpu.memory_space<semaphore_mem>>
    %39 = tpu.memref_squeeze %38 : memref<1x!tpu.dma_semaphore, #tpu.memory_space<semaphore_mem>> -> memref<!tpu.dma_semaphore, #tpu.memory_space<semaphore_mem>>
    tpu.wait_dma2 semaphore(%39 : memref<!tpu.dma_semaphore, #tpu.memory_space<semaphore_mem>>) src(%35 : memref<1x128xf32, #tpu.memory_space<any>>) dst(%37 : memref<1x128xf32, #tpu.memory_space<vmem>>)
    %c0_i32_28 = arith.constant 0 : i32
    %c0_i32_29 = arith.constant 0 : i32
    %c0_i32_30 = arith.constant 0 : i32
    %40 = tpu.memref_slice %arg4[%c0_i32_28, %c0_i32_29, %c0_i32_30] : memref<2x16x128xf32, #tpu.memory_space<any>> -> memref<1x1x128xf32, #tpu.memory_space<any>>
    %41 = tpu.memref_squeeze %40 : memref<1x1x128xf32, #tpu.memory_space<any>> -> memref<1x128xf32, #tpu.memory_space<any>>
    %c5_i32 = arith.constant 5 : i32
    %c0_i32_31 = arith.constant 0 : i32
    %42 = tpu.memref_slice %arg6[%0, %c5_i32, %c0_i32_31] : memref<2x8x128xf32, #tpu.memory_space<vmem>> -> memref<1x1x128xf32, #tpu.memory_space<vmem>>
    %43 = tpu.memref_squeeze %42 : memref<1x1x128xf32, #tpu.memory_space<vmem>> -> memref<1x128xf32, #tpu.memory_space<vmem>>
    %44 = tpu.memref_slice %arg7[%0] : memref<2x!tpu.dma_semaphore, #tpu.memory_space<semaphore_mem>> -> memref<1x!tpu.dma_semaphore, #tpu.memory_space<semaphore_mem>>
    %45 = tpu.memref_squeeze %44 : memref<1x!tpu.dma_semaphore, #tpu.memory_space<semaphore_mem>> -> memref<!tpu.dma_semaphore, #tpu.memory_space<semaphore_mem>>
    tpu.wait_dma2 semaphore(%45 : memref<!tpu.dma_semaphore, #tpu.memory_space<semaphore_mem>>) src(%41 : memref<1x128xf32, #tpu.memory_space<any>>) dst(%43 : memref<1x128xf32, #tpu.memory_space<vmem>>)
    %c0_i32_32 = arith.constant 0 : i32
    %c0_i32_33 = arith.constant 0 : i32
    %c0_i32_34 = arith.constant 0 : i32
    %46 = tpu.memref_slice %arg4[%c0_i32_32, %c0_i32_33, %c0_i32_34] : memref<2x16x128xf32, #tpu.memory_space<any>> -> memref<1x1x128xf32, #tpu.memory_space<any>>
    %47 = tpu.memref_squeeze %46 : memref<1x1x128xf32, #tpu.memory_space<any>> -> memref<1x128xf32, #tpu.memory_space<any>>
    %c6_i32 = arith.constant 6 : i32
    %c0_i32_35 = arith.constant 0 : i32
    %48 = tpu.memref_slice %arg6[%0, %c6_i32, %c0_i32_35] : memref<2x8x128xf32, #tpu.memory_space<vmem>> -> memref<1x1x128xf32, #tpu.memory_space<vmem>>
    %49 = tpu.memref_squeeze %48 : memref<1x1x128xf32, #tpu.memory_space<vmem>> -> memref<1x128xf32, #tpu.memory_space<vmem>>
    %50 = tpu.memref_slice %arg7[%0] : memref<2x!tpu.dma_semaphore, #tpu.memory_space<semaphore_mem>> -> memref<1x!tpu.dma_semaphore, #tpu.memory_space<semaphore_mem>>
    %51 = tpu.memref_squeeze %50 : memref<1x!tpu.dma_semaphore, #tpu.memory_space<semaphore_mem>> -> memref<!tpu.dma_semaphore, #tpu.memory_space<semaphore_mem>>
    tpu.wait_dma2 semaphore(%51 : memref<!tpu.dma_semaphore, #tpu.memory_space<semaphore_mem>>) src(%47 : memref<1x128xf32, #tpu.memory_space<any>>) dst(%49 : memref<1x128xf32, #tpu.memory_space<vmem>>)
    %c0_i32_36 = arith.constant 0 : i32
    %c0_i32_37 = arith.constant 0 : i32
    %c0_i32_38 = arith.constant 0 : i32
    %52 = tpu.memref_slice %arg4[%c0_i32_36, %c0_i32_37, %c0_i32_38] : memref<2x16x128xf32, #tpu.memory_space<any>> -> memref<1x1x128xf32, #tpu.memory_space<any>>
    %53 = tpu.memref_squeeze %52 : memref<1x1x128xf32, #tpu.memory_space<any>> -> memref<1x128xf32, #tpu.memory_space<any>>
    %c7_i32 = arith.constant 7 : i32
    %c0_i32_39 = arith.constant 0 : i32
    %54 = tpu.memref_slice %arg6[%0, %c7_i32, %c0_i32_39] : memref<2x8x128xf32, #tpu.memory_space<vmem>> -> memref<1x1x128xf32, #tpu.memory_space<vmem>>
    %55 = tpu.memref_squeeze %54 : memref<1x1x128xf32, #tpu.memory_space<vmem>> -> memref<1x128xf32, #tpu.memory_space<vmem>>
    %56 = tpu.memref_slice %arg7[%0] : memref<2x!tpu.dma_semaphore, #tpu.memory_space<semaphore_mem>> -> memref<1x!tpu.dma_semaphore, #tpu.memory_space<semaphore_mem>>
    %57 = tpu.memref_squeeze %56 : memref<1x!tpu.dma_semaphore, #tpu.memory_space<semaphore_mem>> -> memref<!tpu.dma_semaphore, #tpu.memory_space<semaphore_mem>>
    tpu.wait_dma2 semaphore(%57 : memref<!tpu.dma_semaphore, #tpu.memory_space<semaphore_mem>>) src(%53 : memref<1x128xf32, #tpu.memory_space<any>>) dst(%55 : memref<1x128xf32, #tpu.memory_space<vmem>>)
    %58 = arith.index_cast %0 : i32 to index
    %c0 = arith.constant 0 : index
    %c0_40 = arith.constant 0 : index
    %59 = vector.load %arg6[%58, %c0, %c0_40] : memref<2x8x128xf32, #tpu.memory_space<vmem>>, vector<1x8x128xf32>
    %60 = vector.shape_cast %59 : vector<1x8x128xf32> to vector<8x128xf32>
    %c0_41 = arith.constant 0 : index
    %c0_42 = arith.constant 0 : index
    %c0_43 = arith.constant 0 : index
    %61 = vector.load %arg3[%c0_41, %c0_42, %c0_43] : memref<1x8x1xf32, #tpu.memory_space<vmem>>, vector<1x8x1xf32>
    %62 = vector.shape_cast %61 : vector<1x8x1xf32> to vector<8x1xf32>
    %63 = vector.broadcast %62 : vector<8x1xf32> to vector<8x128xf32>
    %64 = arith.mulf %60, %63 : vector<8x128xf32>
    %c0_44 = arith.constant 0 : index
    %c0_45 = arith.constant 0 : index
    %c0_46 = arith.constant 0 : index
    %65 = vector.load %arg5[%c0_44, %c0_45, %c0_46] : memref<1x8x128xf32, #tpu.memory_space<vmem>>, vector<1x8x128xf32>
    %66 = vector.shape_cast %65 : vector<1x8x128xf32> to vector<8x128xf32>
    %67 = vector.shape_cast %64 : vector<8x128xf32> to vector<1x8x128xf32>
    tpu.vector_store %arg5[%c0_44, %c0_45, %c0_46], %67 {strides = array<i32>} : memref<1x8x128xf32, #tpu.memory_space<vmem>>, vector<1x8x128xf32>,
    return
  }
  func.func @transform_0(%arg0: i32, %arg1: memref<2x8xi32, #tpu.memory_space<smem>>) -> (i32, i32, i32) {
    %c0_i32 = arith.constant 0 : i32
    %c0_i32_0 = arith.constant 0 : i32
    %c0_i32_1 = arith.constant 0 : i32
    return %arg0, %c0_i32, %c0_i32_0 : i32, i32, i32
  }
  func.func @transform_1(%arg0: i32, %arg1: memref<2x8xi32, #tpu.memory_space<smem>>) -> (i32, i32, i32) {
    %c0_i32 = arith.constant 0 : i32
    %c0_i32_0 = arith.constant 0 : i32
    %c0_i32_1 = arith.constant 0 : i32
    return %arg0, %c0_i32, %c0_i32_0 : i32, i32, i32
  }
  func.func @transform_3(%arg0: i32, %arg1: memref<2x8xi32, #tpu.memory_space<smem>>) -> (i32, i32, i32) {
    %c0_i32 = arith.constant 0 : i32
    %c0_i32_0 = arith.constant 0 : i32
    %c0_i32_1 = arith.constant 0 : i32
    return %arg0, %c0_i32, %c0_i32_0 : i32, i32, i32
  }
}

</mosaic_0001>

<bundles_post_ra>
// kernel: pooling_sent_rep.1
= control target key start
LH: loop header
LB: loop body
LE: loop exit
PB: predicated region body
PF: predicated region fallthrough
CT: control target
= control target key end

     0   :  { %s1771_s0 = inlined_call_operand.vmem [shape: s32[2,8], index: 0, kind: input, shape index: {}]   ;;  %s1772_s1 = inlined_call_operand.vmem [shape: s32[2,8,1], index: 1, kind: input, shape index: {}]   ;;  %s1773_s2 = inlined_call_operand.vmem [shape: f32[2,8,1], index: 2, kind: input, shape index: {}]   ;;  %s1774_s3 = inlined_call_operand.vmem [shape: f32[2,16,128], index: 3, kind: input, shape index: {}]   ;;  %s1775_s4 = inlined_call_operand.hbm [shape: f32[2,8,128], index: 4, kind: output, shape index: {}]  }
   0x1   :  { %s9_s17 = sshll.u32 %s1771_s0, 4  ;;  %s10_s17 = int_to_ptr.vmem [resolvable:$true] %s9_s17 }
   0x2   :  { %s1441_s18 = scalar_lea.vmem %s10_s17, 32  ;;  %p1446_p1 = scmp.lt.s32.totalorder %s10_s17, %s10_s17 }
   0x3   :  { %p1442_p0 = scmp.ne.s32.totalorder %s10_s17, %s1441_s18  ;;  %p1447_p2 = scmp.lt.s32.totalorder %s1441_s18, %s1441_s18 }
   0x5   :  { %p1448_p3 = por %p1447_p2, %p1446_p1 }
   0x7   :  { %p1449_p4 = pnand %p1448_p3, %p1442_p0 }
   0x9   :  { %1452 = shalt.err (!%p1449_p4)  }
   0xa   :  { %s1521_s1 = smov [#allocation5]  }
   0xb   :  { %12 = dma.vmem_to_smem %s10_s17, 32, %s1521_s1, [#allocation4] }
   0xc   :  { %1497 = dma.done.wait [#allocation4], 32 }
   0xd   :  { %1498 = vsyncadd [#allocation4], 4294967264 }
   0xe   :  { %14 = sfence }
   0xf   :  { %15 = vsyncpa [#allocation7], 0 }
  0x10   :  { %17 = vsyncpa [#allocation7 + $0x1], 0  ;;  %s1552_s19 = smov 0   ;;  %s1554_s20 = smov 0  }
  0x11   :  { %s1556_s0 = smov 0   ;;  %s1558_s21 = smov 0  }
  0x12 LB: > { %s1573_s22 = sadd.s32 4294967295, %s1519_s21   ;;  %s1328_s23 = sadd.s32 4294967294, %s1519_s21   ;;  %s1519_s21 = sphi %s1558_s21, %s1785_s21   ;;  %s1515_s0 = sphi %s1556_s0, %s1784_s0   ;;  %s1511_s20 = sphi %s1554_s20, %s1783_s20   ;;  %s1507_s19 = sphi %s1552_s19, %s1782_s19  }
  0x13   : > { %s1577_s24 = sadd.s32 1, %s1519_s21   ;;  %s82_s25 = sadd.s32 1, %s1515_s0 }
  0x14   : > { %s79_s26 = ssub.s32 %s1519_s21, %s1577_s24  ;;  %p92_p5 = scmp.ne.s32.totalorder %s1515_s0, %s1511_s20 }
  0x15   : > { %p80_p6 = scmp.eq.s32.totalorder %s79_s26, 0  ;;  %p93_p7 = scmp.eq.s32.totalorder %s1573_s22, 1 }
  0x16   : > { %p98_p8 = scmp.ne.s32.totalorder %s1511_s20, %s1507_s19  ;;  %p99_p9 = scmp.eq.s32.totalorder %s1328_s23, 1 }
  0x17   : > { %s1588_s27 = scalar_select %p80_p6, %s1515_s0, %s82_s25  }
  0x18   : > { %p1590_p10 = por %p93_p7, %p92_p5  ;;  %p1594_p11 = por %p99_p9, %p98_p8 }
  0x19   : > { %p1331_p12 = scmp.ge.s32.totalorder %s1519_s21, 1  ;;  %p131_p13 = scmp.lt.s32.totalorder %s1519_s21, 3 }
  0x1b   : > { %p132_p0 = pnand %p1331_p12, %p131_p13 }
  0x1c   : > { %s1776_s30 = sand.u32 (!%p132_p0), 1, %s1511_s20   ;;  %p160_p1 = scmp.lt.s32.totalorder (!%p132_p0), %s1573_s22, 1 }
  0x1d   : > { %135 = sbr.rel (%p132_p0) target bundleno = 349 (0x15d), region = 28  ;;  %s1604_s5 = sshll.u32 (!%p132_p0), %s1776_s30, 3 }
  0x1e   : > { %s164_s6 = sand.u32 (!%p132_p0), 1, %s1573_s22  ;;  %s165_s7 = sadd.s32 (!%p132_p0), 1, %s1573_s22 }
  0x1f   : > { %s1611_s9 = sand.u32 (!%p132_p0), 1, %s165_s7  ;;  %p1334_p2 = scmp.ne.s32.totalorder (!%p132_p0), %s1573_s22, 0 }
  0x24   : > { %s161_s8 = scalar_select %p160_p1, %s1573_s22, 1 }
  0x25   : > { %170 = sbr.rel (%p1334_p2) target bundleno = 110 (0x6e), region = 32  ;;  %s171_s15 = sld [smem:[#allocation5]] (!%p1334_p2) }
  0x26   : > { %s1333_s10 = sshll.u32 %s161_s8, 3 }
  0x27   : > { %s1616_s13 = scalar_lea.vmem %s1773_s2, %s1333_s10 }
  0x2b   : > { %s172_s18 = scalar_lea.vmem (!%p1334_p2), %s1774_s3, %s171_s15 }
  0x2c   : > { %v190_v0 = vld [vmem:[%s172_s18] sm:$0x1] }
  0x2d   : > { %191 = vst [vmem:[#allocation2] sm:$0x1] %v190_v0 }
  0x2e   : > { %216 = vsyncadd [#allocation3], 16  ;;  %s1335_s1 = sld [smem:[#allocation5 + $0x1]] }
  0x34   : > { %s218_s26 = scalar_lea.vmem %s1774_s3, %s1335_s1 }
  0x35   : > { %v237_v1 = vld [vmem:[%s218_s26] sm:$0x1] }
  0x36   : > { %238 = vst [vmem:[#allocation2 + $0x1] sm:$0x1] %v237_v1 }
  0x37   : > { %263 = vsyncadd [#allocation3], 16  ;;  %s1336_s8 = sld [smem:[#allocation5 + $0x2]] }
  0x3d   : > { %s265_s12 = scalar_lea.vmem %s1774_s3, %s1336_s8 }
  0x3e   : > { %v284_v2 = vld [vmem:[%s265_s12] sm:$0x1] }
  0x3f   : > { %285 = vst [vmem:[#allocation2 + $0x2] sm:$0x1] %v284_v2 }
  0x40   : > { %310 = vsyncadd [#allocation3], 16  ;;  %s1337_s15 = sld [smem:[#allocation5 + $0x3]] }
  0x46   : > { %s312_s18 = scalar_lea.vmem %s1774_s3, %s1337_s15 }
  0x47   : > { %v331_v3 = vld [vmem:[%s312_s18] sm:$0x1] }
  0x48   : > { %332 = vst [vmem:[#allocation2 + $0x3] sm:$0x1] %v331_v3 }
  0x49   : > { %357 = vsyncadd [#allocation3], 16  ;;  %s1338_s1 = sld [smem:[#allocation5 + $0x4]] }
  0x4f   : > { %s359_s26 = scalar_lea.vmem %s1774_s3, %s1338_s1 }
  0x50   : > { %v378_v4 = vld [vmem:[%s359_s26] sm:$0x1] }
  0x51   : > { %379 = vst [vmem:[#allocation2 + $0x4] sm:$0x1] %v378_v4 }
  0x52   : > { %404 = vsyncadd [#allocation3], 16  ;;  %s1339_s8 = sld [smem:[#allocation5 + $0x5]] }
  0x58   : > { %s406_s12 = scalar_lea.vmem %s1774_s3, %s1339_s8 }
  0x59   : > { %v425_v5 = vld [vmem:[%s406_s12] sm:$0x1] }
  0x5a   : > { %426 = vst [vmem:[#allocation2 + $0x5] sm:$0x1] %v425_v5 }
  0x5b   : > { %451 = vsyncadd [#allocation3], 16  ;;  %s1340_s15 = sld [smem:[#allocation5 + $0x6]] }
  0x61   : > { %s453_s18 = scalar_lea.vmem %s1774_s3, %s1340_s15 }
  0x62   : > { %v472_v6 = vld [vmem:[%s453_s18] sm:$0x1] }
  0x63   : > { %473 = vst [vmem:[#allocation2 + $0x6] sm:$0x1] %v472_v6 }
  0x64   : > { %498 = vsyncadd [#allocation3], 16  ;;  %s1341_s1 = sld [smem:[#allocation5 + $0x7]] }
  0x6a   : > { %s500_s26 = scalar_lea.vmem %s1774_s3, %s1341_s1 }
  0x6b   : > { %v519_v7 = vld [vmem:[%s500_s26] sm:$0x1] }
  0x6c   : > { %520 = vst [vmem:[#allocation2 + $0x7] sm:$0x1] %v519_v7 }
  0x6d   : > { %545 = vsyncadd [#allocation3], 16 }
  0x6e PF: > { %p1342_p3 = scmp.ge.s32.totalorder %s165_s7, 2 }
  0x6f   : > { %s1397_s8 = sshll.u32 (!%p1342_p3), %s1573_s22, 7  ;;  %s1651_s12 = sshll.u32 (!%p1342_p3), %s1573_s22, 4 }
  0x70   : > { %549 = sbr.rel (%p1342_p3) target bundleno = 201 (0xc9), region = 276  ;;  %s1647_s10 = sadd.s32 (!%p1342_p3), 128, %s1397_s8 }
  0x71   : > { %s551_s11 = sld [smem:[#allocation5 + %s1647_s10]] (!%p1342_p3)  ;;  %s1345_s15 = sshll.u32 (!%p1342_p3), %s1611_s9, 3 }
  0x72   : > { %s1658_s7 = scalar_lea.vmem (!%p1342_p3), [#allocation2], %s1345_s15  ;;  %s1662_s23 = scalar_lea.sflag (!%p1342_p3), [#allocation3], %s1611_s9 }
  0x77   : > { %s1076_s16 = sadd.s32 %s1651_s12, %s551_s11 }
  0x78   : > { %s1077_s1 = scalar_lea.vmem %s1774_s3, %s1076_s16 }
  0x79   : > { %v1347_v8 = vld [vmem:[%s1077_s1 + $0x10] sm:$0x1] }
  0x7a   : > { %576 = vst [vmem:[%s1658_s7] sm:$0x1] %v1347_v8 }
  0x7b   : > { %601 = vsyncadd %s1662_s23, 16  ;;  %s602_s25 = sadd.s32 1, %s1647_s10 }
  0x7c   : > { %s603_s26 = sld [smem:[#allocation5 + %s602_s25]] }
  0x82   : > { %s1086_s8 = sadd.s32 %s1651_s12, %s603_s26 }
  0x83   : > { %s1087_s16 = scalar_lea.vmem %s1774_s3, %s1086_s8 }
  0x84   : > { %v1352_v9 = vld [vmem:[%s1087_s16 + $0x10] sm:$0x1] }
  0x85   : > { %1353 = vst [vmem:[%s1658_s7 + $0x1] sm:$0x1] %v1352_v9 }
  0x86   : > { %651 = vsyncadd %s1662_s23, 16  ;;  %s652_s9 = sadd.s32 2, %s1647_s10 }
  0x87   : > { %s653_s15 = sld [smem:[#allocation5 + %s652_s9]] }
  0x8d   : > { %s1097_s17 = sadd.s32 %s1651_s12, %s653_s15 }
  0x8e   : > { %s1098_s14 = scalar_lea.vmem %s1774_s3, %s1097_s17 }
  0x8f   : > { %v1358_v10 = vld [vmem:[%s1098_s14 + $0x10] sm:$0x1] }
  0x90   : > { %1359 = vst [vmem:[%s1658_s7 + $0x2] sm:$0x1] %v1358_v10 }
  0x91   : > { %701 = vsyncadd %s1662_s23, 16  ;;  %s702_s30 = sadd.s32 3, %s1647_s10 }
  0x92   : > { %s703_s25 = sld [smem:[#allocation5 + %s702_s30]] }
  0x98   : > { %s1108_s26 = sadd.s32 %s1651_s12, %s703_s25 }
  0x99   : > { %s1109_s16 = scalar_lea.vmem %s1774_s3, %s1108_s26 }
  0x9a   : > { %v1364_v11 = vld [vmem:[%s1109_s16 + $0x10] sm:$0x1] }
  0x9b   : > { %1365 = vst [vmem:[%s1658_s7 + $0x3] sm:$0x1] %v1364_v11 }
  0x9c   : > { %751 = vsyncadd %s1662_s23, 16  ;;  %s752_s14 = sadd.s32 4, %s1647_s10 }
  0x9d   : > { %s753_s9 = sld [smem:[#allocation5 + %s752_s14]] }
  0xa3   : > { %s1119_s15 = sadd.s32 %s1651_s12, %s753_s9 }
  0xa4   : > { %s1120_s1 = scalar_lea.vmem %s1774_s3, %s1119_s15 }
  0xa5   : > { %v1370_v12 = vld [vmem:[%s1120_s1 + $0x10] sm:$0x1] }
  0xa6   : > { %1371 = vst [vmem:[%s1658_s7 + $0x4] sm:$0x1] %v1370_v12 }
  0xa7   : > { %801 = vsyncadd %s1662_s23, 16  ;;  %s802_s30 = sadd.s32 5, %s1647_s10 }
  0xa8   : > { %s803_s25 = sld [smem:[#allocation5 + %s802_s30]] }
  0xae   : > { %s1130_s26 = sadd.s32 %s1651_s12, %s803_s25 }
  0xaf   : > { %s1131_s16 = scalar_lea.vmem %s1774_s3, %s1130_s26 }
  0xb0   : > { %v1376_v13 = vld [vmem:[%s1131_s16 + $0x10] sm:$0x1] }
  0xb1   : > { %1377 = vst [vmem:[%s1658_s7 + $0x5] sm:$0x1] %v1376_v13 }
  0xb2   : > { %851 = vsyncadd %s1662_s23, 16  ;;  %s852_s14 = sadd.s32 6, %s1647_s10 }
  0xb3   : > { %s853_s9 = sld [smem:[#allocation5 + %s852_s14]] }
  0xb9   : > { %s1141_s15 = sadd.s32 %s1651_s12, %s853_s9 }
  0xba   : > { %s1142_s1 = scalar_lea.vmem %s1774_s3, %s1141_s15 }
  0xbb   : > { %v1382_v14 = vld [vmem:[%s1142_s1 + $0x10] sm:$0x1] }
  0xbc   : > { %1383 = vst [vmem:[%s1658_s7 + $0x6] sm:$0x1] %v1382_v14 }
  0xbd   : > { %901 = vsyncadd %s1662_s23, 16  ;;  %s902_s30 = sadd.s32 7, %s1647_s10 }
  0xbe   : > { %s903_s25 = sld [smem:[#allocation5 + %s902_s30]] }
  0xc4   : > { %s1152_s26 = sadd.s32 %s1651_s12, %s903_s25 }
  0xc5   : > { %s1153_s16 = scalar_lea.vmem %s1774_s3, %s1152_s26 }
  0xc6   : > { %v1388_v15 = vld [vmem:[%s1153_s16 + $0x10] sm:$0x1] }
  0xc7   : > { %1389 = vst [vmem:[%s1658_s7 + $0x7] sm:$0x1] %v1388_v15 }
  0xc8   : > { %951 = vsyncadd %s1662_s23, 16 }
  0xc9 PF: > { %s952_s14 = scalar_lea.sflag [#allocation3], %s164_s6 }
  0xca   : > { %1499 = dma.done.wait %s952_s14, 128 }
  0xcb   : > { %1500 = vsyncadd %s952_s14, 4294967168  ;;  %v1522_v16 = vmov 0   ;;  %v973_v17 = vld [vmem:[%s1616_s13] sm:$0xff]  ;;  %s1390_s10 = sshll.u32 %s164_s6, 3  ;;  %s1392_s7 = sshll.u32 %s1573_s22, 7 }
  0xcc   : > { %1440 = vset.pattern.permute.xlu0 %v1522_v16  ;;  %s971_s12 = scalar_lea.vmem [#allocation2], %s1390_s10  ;;  %s1779_s23 = scalar_lea.vmem [#allocation6], %s1604_s5 }
  0xcd   : > { %976 = vperm.xlu0 %1440, %v973_v17   ;;  %s995_s9 = sshll.u32 %s1779_s23, 4  ;;  %s1725_s18 = scalar_lea.hbm %s1775_s4, %s1392_s7  ;;  %s1727_s9 = int_to_ptr.vmem [resolvable:$true] %s995_s9 }
  0xce   : > { %v972_v18 = vld [vmem:[%s971_s12] sm:$0xff]  ;;  %s1780_s1 = smov %s1779_s23  ;;  %s1781_s6 = sand.u32 1, %s1511_s20  }
  0xcf   : > { %s982_s13 = scalar_lea.sflag [#allocation7], %s1781_s6  ;;  %s1453_s30 = scalar_lea.vmem %s1727_s9, 128 }
  0xd0   : > { %p1454_p4 = scmp.ne.s32.totalorder %s1727_s9, %s1453_s30  ;;  %s1523_s22 = smov [#allocation6]  }
  0xd1   : > { %s1457_s25 = sshll.u32 %s1523_s22, 4  ;;  %s1458_s25 = int_to_ptr.vmem [resolvable:$false] %s1457_s25 }
  0xd2   : > { %p1455_p5 = pnand %p1454_p4, %p1590_p10  ;;  %s1459_s26 = scalar_lea.vmem %s1458_s25, 256 }
  0xd3   : > { %p1460_p7 = scmp.lt.s32.totalorder %s1727_s9, %s1458_s25  ;;  %p1461_p8 = scmp.lt.s32.totalorder %s1459_s26, %s1453_s30 }
  0xd4   : > { %p1456_p6 = pneg %p1455_p5 }
  0xd5   : > { %p1462_p9 = por %p1461_p8, %p1460_p7 }
  0xd7   : > { %p1463_p12 = pnand %p1462_p9, %p1456_p6 }
 0x14c   : > { %v977_v19 = vpop.permute.xlu0 %976 }
 0x14d   : > { %v979_v20 = vmul.f32 %v977_v19, %v972_v18 }
 0x14f   : > { %980 = vst [vmem:[%s1780_s1] sm:$0xff] %v979_v20 }
 0x150   : > { %1466 = shalt.err (!%p1463_p12)
}
 0x151   : > { %s1467_s5 = scalar_lea.hbm %s1725_s18, 128  ;;  %s1471_s16 = scalar_lea.hbm %s1775_s4, 256 }
 0x152   : > { %p1468_p13 = scmp.ne.s32.totalorder %s1725_s18, %s1467_s5  ;;  %p1472_p2 = scmp.lt.u32.totalorder %s1725_s18, %s1775_s4 }
 0x153   : > { %p1473_p3 = scmp.lt.u32.totalorder %s1471_s16, %s1467_s5  ;;  %p1475_p5 = scmp.lt.u32.totalorder %s1467_s5, %s1725_s18 }
 0x154   : > { %p1469_p0 = pnand %p1468_p13, %p1590_p10 }
 0x155   : > { %p1474_p4 = por %p1473_p3, %p1472_p2 }
 0x156   : > { %p1470_p1 = pneg %p1469_p0 }
 0x157   : > { %p1476_p6 = por %p1475_p5, %p1474_p4 }
 0x159   : > { %p1477_p7 = pnand %p1476_p6, %p1470_p1 }
 0x15b   : > { %1480 = shalt.err (!%p1477_p7)
}
 0x15c   : > { %1399 = dma.vmem_to_hbm [thread:$0]  (%p1590_p10), %s1727_s9, 128, %s1725_s18, %s982_s13  }
 0x15d PF: > { %p1405_p8 = scmp.ge.s32.totalorder %s1519_s21, 2  ;;  %s1007_s12 = sand.u32 1, %s1507_s19  }
 0x15e   : > { %s1008_s7 = scalar_lea.sflag [#allocation7], %s1007_s12 }
 0x15f   : > { %p1402_p9 = pnand %p1405_p8, %p1594_p11 }
 0x161   : > { %1502 = dma.done.wait (!%p1402_p9), %s1008_s7, 128  }
 0x162   : > { %1504 = vsyncadd (!%p1402_p9), %s1008_s7, 4294967168  ;;  %p20_p12 = scmp.ge.s32.totalorder %s1577_s24, 4   ;;  %s1782_s19 = smov %s1511_s20 }
 0x163   : > { %s1783_s20 = smov %s1515_s0  ;;  %s1784_s0 = smov %s1588_s27 }
 0x164   : > { %s1785_s21 = smov %s1577_s24  ;;  %22 = sbr.rel (!%p20_p12) target bundleno = 18 (0x12), region = 749 }
 0x16b   :  { %1013 = vsyncpa [#allocation7], 1 }
 0x16c   :  { %1015 = vsyncpa [#allocation7 + $0x1], 1 }
 0x16d   :  { %1016 = vsyncmov [#allocation3] }
 0x170   :  { %s1017_s21 = vpop.sfrf %1016 }
 0x171   :  { %p1395_p10 = scmp.ne.s32.totalorder %s1017_s21, 0 }
 0x173   :  { %1021 = shalt.err (%p1395_p10)  }
 0x174   :  { %1023 = vsyncmov [#allocation3 + $0x1] }
 0x177   :  { %s1024_s28 = vpop.sfrf %1023 }
 0x178   :  { %p1396_p11 = scmp.ne.s32.totalorder %s1024_s28, 0 }
 0x17a   :  { %1028 = shalt.err (%p1396_p11)  }

</bundles_post_ra>
